<compile_context>
chip_gen: v7x
topology: tpu7x:2x2x1
jax: 0.10.0
libtpu: 0.0.40
codegen_flags: <defaults>
</compile_context>

<pallas_src>
import numpy as np
import jax
import jax.numpy as jnp
from jax.experimental import pallas as pl
from jax.experimental.pallas import tpu as pltpu


def _cdiv(a, b):
    return -(-a // b)


# ----------------------------------------------------------------------------
# Pallas kernel: broadcast outer-sum of the two precomputed affine factors
# ----------------------------------------------------------------------------
def _coord_grid_kernel(xc_ref, yz_ref, out_ref):
    """xc_ref: (3, bx, 1, 128)  -- A[c,0]*x, lane-replicated.
       yz_ref: (3, br, 128)     -- A[c,1]*y + A[c,2]*z + A[c,3] for the plane rows.
       out_ref: (3, bx, br, 128) output tile (lane-dense)."""
    # (bx,1,128) + (br,128) broadcasts to (bx,br,128): 1 VALU add per element.
    out_ref[0] = (xc_ref[0] + yz_ref[0]).astype(out_ref.dtype)
    out_ref[1] = (xc_ref[1] + yz_ref[1]).astype(out_ref.dtype)
    out_ref[2] = (xc_ref[2] + yz_ref[2]).astype(out_ref.dtype)


def _plan_tiling(gx, plane_rows, max_rows):
    """Pick (y,z)-plane row block `br`, padded plane rows, and x-plane block `bx`.

    VMEM footprint per output buffer = 3 * bx * max(br, 8) * 128 * 4 bytes,
    kept <= 3 * max_rows * 128 * 4 (~1.5 MiB at max_rows=1024)."""
    assert max_rows >= 1
    if plane_rows <= max_rows:
        plane_rows_pad, br = plane_rows, plane_rows       # full-dim block (always legal)
    else:
        plane_rows_pad = _cdiv(plane_rows, 8) * 8
        br = 8
        start = max(8, (min(max_rows, plane_rows_pad) // 8) * 8)
        for cand in range(start, 7, -8):                  # multiples of 8 only
            if plane_rows_pad % cand == 0:
                br = cand
                break
    plane_steps = plane_rows_pad // br

    # x-planes per tile; max(br, 8) accounts for sublane padding of small planes.
    target = max(1, min(gx, max_rows // max(br, 8)))
    bx = 1
    for d in range(target, 0, -1):                        # prefer an exact divisor of gx
        if gx % d == 0:
            bx = d
            break
    gx_pad = gx
    if bx < max(1, target // 2):                          # poor divisor (e.g. prime gx)
        bx = target                                       # -> pad gx, wrapper slices it off
        gx_pad = _cdiv(gx, bx) * bx
    x_steps = gx_pad // bx
    return br, plane_rows_pad, plane_steps, bx, gx_pad, x_steps


def sample_coordinate_grid_pallas(A, grid_size_sample, *, max_rows=1024,
                                  out_dtype=jnp.float32):
    """A: (3,4) float64 affine mapping integer voxel indices (x,y,z,1) to world
    coordinates (centering + resolution already folded in).
    Returns a (3, X, Y, Z) `out_dtype` coordinate grid."""
    A = np.asarray(A, dtype=np.float64)
    gx, gy, gz = (int(s) for s in grid_size_sample)
    assert gx > 0 and gy > 0 and gz > 0, "grid dims must be positive"
    assert max(gx, gy, gz) < 2 ** 24, "grid dim too large for exact float32 index math"
    plane = gy * gz
    plane_rows = _cdiv(plane, 128)
    assert plane_rows * 128 < 2 ** 31, "yz plane too large for int32 index math"

    br, plane_rows_pad, plane_steps, bx, gx_pad, x_steps = _plan_tiling(
        gx, plane_rows, max_rows)

    # Host-side (float64) rank-1 factors of the fused affine map.
    m = np.arange(plane_rows_pad * 128, dtype=np.int64)
    yz64 = A[:, 1:2] * (m // gz) + A[:, 2:3] * (m % gz) + A[:, 3:4]     # (3, P*128)
    yz = jnp.asarray(yz64.reshape(3, plane_rows_pad, 128), dtype=jnp.float32)
    x64 = A[:, 0:1] * np.arange(gx_pad, dtype=np.int64)                 # (3, gx_pad)
    xc = jnp.asarray(np.broadcast_to(x64[:, :, None, None], (3, gx_pad, 1, 128)),
                     dtype=jnp.float32)

    itemsize = int(np.dtype(out_dtype).itemsize)
    n_out = 3 * gx_pad * plane_rows_pad * 128

    out = pl.pallas_call(
        _coord_grid_kernel,
        out_shape=jax.ShapeDtypeStruct((3, gx_pad, plane_rows_pad, 128), out_dtype),
        grid=(plane_steps, x_steps),     # plane axis OUTER -> yz block stays resident
        in_specs=[
            pl.BlockSpec((3, bx, 1, 128), lambda j, i: (0, i, 0, 0)),
            pl.BlockSpec((3, br, 128), lambda j, i: (0, j, 0)),
        ],
        out_specs=pl.BlockSpec((3, bx, br, 128), lambda j, i: (0, i, j, 0)),
        compiler_params=pltpu.CompilerParams(
            dimension_semantics=("arbitrary", "parallel")),
        cost_estimate=pl.CostEstimate(
            flops=n_out, transcendentals=0,
            bytes_accessed=n_out * itemsize + int(yz.size) * 4 + int(xc.size) * 4),
    )(xc, yz)

    # Strip padding (no-op for aligned shapes) and reshape to (3, X, Y, Z).
    if gx_pad != gx:
        out = out[:, :gx]
    out = out.reshape(3, gx, plane_rows_pad * 128)
    if plane_rows_pad * 128 != plane:
        out = out[:, :, :plane]
    return out.reshape(3, gx, gy, gz)


# ----------------------------------------------------------------------------
# Host-side fusion: fold centered-grid construction into the rigid transform
# ----------------------------------------------------------------------------
def _fuse_index_affine(M, grid_size_sample, res):
    """A = M @ S, mapping integer voxel indices (x,y,z,1) to world coords."""
    # TODO(synk): compute_coordinates source unavailable; assumed symmetric
    #             centered grid  coord = (idx - (size-1)/2) * resolution.
    gx, gy, gz = grid_size_sample
    S = np.eye(4, dtype=np.float64)
    S[0, 0] = S[1, 1] = S[2, 2] = float(res)
    S[0, 3] = -float(res) * (gx - 1) / 2.0
    S[1, 3] = -float(res) * (gy - 1) / 2.0
    S[2, 3] = -float(res) * (gz - 1) / 2.0
    return np.asarray(M, dtype=np.float64) @ S      # (3, 4)


# ----------------------------------------------------------------------------
# Module glue (pose algebra, random transforms, metadata) -- plain numpy
# ----------------------------------------------------------------------------
def invert_pose(R, t):
    R_inv = R.T
    t_inv = -R_inv @ t
    T_inv = np.eye(4, dtype=np.float64)
    T_inv[:3, :3] = R_inv
    T_inv[:3, 3] = t_inv
    return R_inv, t_inv, T_inv


class SampleCoordinateGrid:
    def __init__(self, config):
        self.config = config
        chunk_cube_size_image = config["grid_resolution"] * np.array(config["grid_size"], dtype=np.float64)
        chunk_cube_size_sampled = config["grid_resolution_sample"] * np.array(config["grid_size_sample"], dtype=np.float64)
        norm_center_corner_sampled = np.linalg.norm(chunk_cube_size_sampled / 2.0)
        self.translation_margin = chunk_cube_size_image / 2 - norm_center_corner_sampled
        self.translation_margin[self.translation_margin < 0] = 0
        self.initial_center_point = np.array(config["center_point"], dtype=np.float64)
        self._rng = np.random.default_rng(0)  # deterministic stand-in for np.random.*
        self.training = False

    def random_rotation_matrix(self, axis=None, max_angle=180):
        if axis is None:
            axis = self._rng.standard_normal(3)
        axis = np.asarray(axis, dtype=np.float64)
        axis = axis / np.linalg.norm(axis)
        max_angle_rad = np.deg2rad(max_angle)
        theta = self._rng.uniform(-max_angle_rad, max_angle_rad)
        half_theta = theta / 2.0
        w = np.cos(half_theta)
        x, y, z = np.sin(half_theta) * axis
        R = np.array([
            [1 - 2 * (y ** 2 + z ** 2), 2 * (x * y - z * w), 2 * (x * z + y * w)],
            [2 * (x * y + z * w), 1 - 2 * (x ** 2 + z ** 2), 2 * (y * z - x * w)],
            [2 * (x * z - y * w), 2 * (y * z + x * w), 1 - 2 * (x ** 2 + y ** 2)]])
        return R

    def random_translation(self):
        if (self.translation_margin == 0).all():
            t_delta = self._rng.uniform(-np.array([0.1, 0.1, 0.1]), np.array([0.1, 0.1, 0.1]))
        else:
            t_delta = self.translation_margin * self._rng.uniform(-np.ones(3), np.ones(3))
        return (self.initial_center_point + t_delta).reshape(3, 1)

    def forward(self, data):
        cfg = self.config
        T_0w = np.asarray(data["cameras"][0]["T_cw"], dtype=np.float64)
        _, _, T_w0 = invert_pose(T_0w[:3, :3], T_0w[:3, 3])

        if self.training:
            R_random = (self.random_rotation_matrix(axis=T_0w[:3, 2])
                        if cfg["enable_rotation"] else np.eye(3))
            t_random = (self.random_translation() if cfg["enable_translation"]
                        else self.initial_center_point.reshape(3, 1))
            T_random = np.concatenate(
                [np.concatenate([R_random, t_random], axis=1),
                 np.array([[0.0, 0.0, 0.0, 1.0]])], axis=0)
        else:
            T_random = np.eye(4)
            t_random = self.initial_center_point
            T_random[:3, 3] = t_random

        # Fused transform (world transform + centered-grid construction),
        # evaluated over every voxel index by the Pallas kernel.
        M = T_w0[:3, :] @ T_random                                   # (3, 4) f64
        A = _fuse_index_affine(M, cfg["grid_size_sample"], cfg["grid_resolution_sample"])

        coords_grid = sample_coordinate_grid_pallas(A, cfg["grid_size_sample"])

        data["coordinates"] = coords_grid  # (3, X, Y, Z) float32
        data.setdefault("verbose", {})
        data["verbose"]["grid_size"] = cfg["grid_size_sample"]
        data["verbose"]["resolution"] = cfg["grid_resolution_sample"]
        data["verbose"]["center"] = np.asarray(t_random).flatten()
        data["verbose"]["T_random"] = T_random
        return data

    __call__ = forward


# ----------------------------------------------------------------------------
# Pure reference (numpy, float64) for verification
# ----------------------------------------------------------------------------
def _reference(M, grid_size_sample, res):
    gx, gy, gz = grid_size_sample
    idx = np.arange(gx * gy * gz)
    xi = idx // (gy * gz)
    yi = (idx // gz) % gy
    zi = idx % gz
    pts = np.stack([(xi - (gx - 1) / 2.0) * res,
                    (yi - (gy - 1) / 2.0) * res,
                    (zi - (gz - 1) / 2.0) * res,
                    np.ones_like(idx, dtype=np.float64)], axis=0)  # (4, N)
    out = np.asarray(M, dtype=np.float64) @ pts                     # (3, N)
    return out.reshape(3, gx, gy, gz).astype(np.float32)


# ----------------------------------------------------------------------------
# Main
# ----------------------------------------------------------------------------
if __name__ == "__main__":
    config = {
        "grid_resolution": 0.08,
        "grid_size": [32, 32, 32],
        "grid_resolution_sample": 0.04,
        "grid_size_sample": [8, 8, 8],       # small demo: N = 512 points
        "center_point": [0.10, -0.20, 0.50],
        "enable_rotation": True,
        "enable_translation": True,
    }

    # Deterministic camera pose T_cw built from PRNGKey(0)
    key = jax.random.PRNGKey(0)
    k_axis, k_trans = jax.random.split(key)
    axis = np.asarray(jax.random.normal(k_axis, (3,)), dtype=np.float64)
    axis /= np.linalg.norm(axis)
    angle = 0.7
    K = np.array([[0, -axis[2], axis[1]],
                  [axis[2], 0, -axis[0]],
                  [-axis[1], axis[0], 0]])
    R_cw = np.eye(3) + np.sin(angle) * K + (1 - np.cos(angle)) * (K @ K)
    t_cw = np.asarray(jax.random.normal(k_trans, (3,)), dtype=np.float64) * 0.5
    T_cw = np.eye(4)
    T_cw[:3, :3] = R_cw
    T_cw[:3, 3] = t_cw

    data = {"cameras": [{"T_cw": T_cw}]}

    module = SampleCoordinateGrid(config)
    module.training = False  # eval branch (deterministic), as in module.eval()

    out = module(data)
    coords = jax.block_until_ready(out["coordinates"])

    # Verify the module path against a pure-numpy reference of the same math.
    _, _, T_w0 = invert_pose(T_cw[:3, :3], T_cw[:3, 3])
    T_random = np.eye(4)
    T_random[:3, 3] = np.array(config["center_point"])
    M_ref = T_w0[:3, :] @ T_random
    ref = _reference(M_ref, config["grid_size_sample"], config["grid_resolution_sample"])

    assert coords.shape == (3, 8, 8, 8) and coords.dtype == jnp.float32
    np.testing.assert_allclose(np.asarray(coords), ref, rtol=1e-5, atol=1e-5)

    # Extra shape coverage of the tiler (divisor / padded-gx / blocked-plane /
    # lane-padding branches), checked directly against the numpy reference.
    M_test = np.array([[0.90, -0.10, 0.20, 0.30],
                       [0.05, 1.10, -0.20, -0.40],
                       [-0.30, 0.20, 0.95, 0.80]], dtype=np.float64)
    cases = [
        ((6, 16, 16), 0.03, {}),                 # plane_rows=2, single grid step
        ((16, 8, 16), 0.02, {"max_rows": 32}),   # bx=4 exact divisor, 4 x-steps
        ((7, 8, 16), 0.02, {"max_rows": 32}),    # prime gx -> padded gx, sliced off
        ((4, 16, 128), 0.01, {"max_rows": 8}),   # plane blocked along rows (2 plane-steps)
        ((5, 6, 10), 0.05, {}),                  # plane=60 -> lane padding sliced off
    ]
    for gs, res, kw in cases:
        A_case = _fuse_index_affine(M_test, gs, res)
        got = np.asarray(jax.block_until_ready(
            sample_coordinate_grid_pallas(A_case, gs, **kw)))
        np.testing.assert_allclose(got, _reference(M_test, gs, res),
                                   rtol=1e-5, atol=1e-5)

    print("KERNEL_OK")
</pallas_src>

<mosaic_0001>
module attributes {stable_mosaic.version = 11 : i64} {
  func.func @_coord_grid_kernel(%arg0: i32, %arg1: i32, %arg2: memref<3x8x1x128xf32, #tpu.memory_space<vmem>>, %arg3: memref<3x1x128xf32, #tpu.memory_space<vmem>>, %arg4: memref<3x8x1x128xf32, #tpu.memory_space<vmem>>) attributes {dimension_semantics = [#tpu.dimension_semantics<arbitrary>, #tpu.dimension_semantics<parallel>], iteration_bounds = array<i64: 1, 1>, scalar_prefetch = 0 : i64, scratch_operands = 0 : i64, tpu.core_type = #tpu.core_type<tc>, window_params = [{transform_indices = @transform_0, window_bounds = array<i64: 3, 8, 1, 128>}, {transform_indices = @transform_1, window_bounds = array<i64: 3, 1, 128>}, {transform_indices = @transform_2, window_bounds = array<i64: 3, 8, 1, 128>}]} {
    %c0 = arith.constant 0 : index
    %c0_0 = arith.constant 0 : index
    %c0_1 = arith.constant 0 : index
    %c0_2 = arith.constant 0 : index
    %0 = vector.load %arg2[%c0, %c0_0, %c0_1, %c0_2] : memref<3x8x1x128xf32, #tpu.memory_space<vmem>>, vector<1x8x1x128xf32>
    %1 = vector.shape_cast %0 : vector<1x8x1x128xf32> to vector<8x1x128xf32>
    %c0_3 = arith.constant 0 : index
    %c0_4 = arith.constant 0 : index
    %c0_5 = arith.constant 0 : index
    %2 = vector.load %arg3[%c0_3, %c0_4, %c0_5] : memref<3x1x128xf32, #tpu.memory_space<vmem>>, vector<1x1x128xf32>
    %3 = vector.shape_cast %2 : vector<1x1x128xf32> to vector<1x128xf32>
    %4 = vector.shape_cast %3 : vector<1x128xf32> to vector<1x1x128xf32>
    %5 = vector.broadcast %4 : vector<1x1x128xf32> to vector<8x1x128xf32>
    %6 = arith.addf %1, %5 : vector<8x1x128xf32>
    %c0_6 = arith.constant 0 : index
    %c0_7 = arith.constant 0 : index
    %c0_8 = arith.constant 0 : index
    %c0_9 = arith.constant 0 : index
    %7 = vector.load %arg4[%c0_6, %c0_7, %c0_8, %c0_9] : memref<3x8x1x128xf32, #tpu.memory_space<vmem>>, vector<1x8x1x128xf32>
    %8 = vector.shape_cast %7 : vector<1x8x1x128xf32> to vector<8x1x128xf32>
    %9 = vector.shape_cast %6 : vector<8x1x128xf32> to vector<1x8x1x128xf32>
    tpu.vector_store %arg4[%c0_6, %c0_7, %c0_8, %c0_9], %9 {strides = array<i32>} : memref<3x8x1x128xf32, #tpu.memory_space<vmem>>, vector<1x8x1x128xf32>,
    %c1 = arith.constant 1 : index
    %c0_10 = arith.constant 0 : index
    %c0_11 = arith.constant 0 : index
    %c0_12 = arith.constant 0 : index
    %10 = vector.load %arg2[%c1, %c0_10, %c0_11, %c0_12] : memref<3x8x1x128xf32, #tpu.memory_space<vmem>>, vector<1x8x1x128xf32>
    %11 = vector.shape_cast %10 : vector<1x8x1x128xf32> to vector<8x1x128xf32>
    %c1_13 = arith.constant 1 : index
    %c0_14 = arith.constant 0 : index
    %c0_15 = arith.constant 0 : index
    %12 = vector.load %arg3[%c1_13, %c0_14, %c0_15] : memref<3x1x128xf32, #tpu.memory_space<vmem>>, vector<1x1x128xf32>
    %13 = vector.shape_cast %12 : vector<1x1x128xf32> to vector<1x128xf32>
    %14 = vector.shape_cast %13 : vector<1x128xf32> to vector<1x1x128xf32>
    %15 = vector.broadcast %14 : vector<1x1x128xf32> to vector<8x1x128xf32>
    %16 = arith.addf %11, %15 : vector<8x1x128xf32>
    %c1_16 = arith.constant 1 : index
    %c0_17 = arith.constant 0 : index
    %c0_18 = arith.constant 0 : index
    %c0_19 = arith.constant 0 : index
    %17 = vector.load %arg4[%c1_16, %c0_17, %c0_18, %c0_19] : memref<3x8x1x128xf32, #tpu.memory_space<vmem>>, vector<1x8x1x128xf32>
    %18 = vector.shape_cast %17 : vector<1x8x1x128xf32> to vector<8x1x128xf32>
    %19 = vector.shape_cast %16 : vector<8x1x128xf32> to vector<1x8x1x128xf32>
    tpu.vector_store %arg4[%c1_16, %c0_17, %c0_18, %c0_19], %19 {strides = array<i32>} : memref<3x8x1x128xf32, #tpu.memory_space<vmem>>, vector<1x8x1x128xf32>,
    %c2 = arith.constant 2 : index
    %c0_20 = arith.constant 0 : index
    %c0_21 = arith.constant 0 : index
    %c0_22 = arith.constant 0 : index
    %20 = vector.load %arg2[%c2, %c0_20, %c0_21, %c0_22] : memref<3x8x1x128xf32, #tpu.memory_space<vmem>>, vector<1x8x1x128xf32>
    %21 = vector.shape_cast %20 : vector<1x8x1x128xf32> to vector<8x1x128xf32>
    %c2_23 = arith.constant 2 : index
    %c0_24 = arith.constant 0 : index
    %c0_25 = arith.constant 0 : index
    %22 = vector.load %arg3[%c2_23, %c0_24, %c0_25] : memref<3x1x128xf32, #tpu.memory_space<vmem>>, vector<1x1x128xf32>
    %23 = vector.shape_cast %22 : vector<1x1x128xf32> to vector<1x128xf32>
    %24 = vector.shape_cast %23 : vector<1x128xf32> to vector<1x1x128xf32>
    %25 = vector.broadcast %24 : vector<1x1x128xf32> to vector<8x1x128xf32>
    %26 = arith.addf %21, %25 : vector<8x1x128xf32>
    %c2_26 = arith.constant 2 : index
    %c0_27 = arith.constant 0 : index
    %c0_28 = arith.constant 0 : index
    %c0_29 = arith.constant 0 : index
    %27 = vector.load %arg4[%c2_26, %c0_27, %c0_28, %c0_29] : memref<3x8x1x128xf32, #tpu.memory_space<vmem>>, vector<1x8x1x128xf32>
    %28 = vector.shape_cast %27 : vector<1x8x1x128xf32> to vector<8x1x128xf32>
    %29 = vector.shape_cast %26 : vector<8x1x128xf32> to vector<1x8x1x128xf32>
    tpu.vector_store %arg4[%c2_26, %c0_27, %c0_28, %c0_29], %29 {strides = array<i32>} : memref<3x8x1x128xf32, #tpu.memory_space<vmem>>, vector<1x8x1x128xf32>,
    return
  }
  func.func @transform_0(%arg0: i32, %arg1: i32) -> (i32, i32, i32, i32) {
    %c0_i32 = arith.constant 0 : i32
    %c0_i32_0 = arith.constant 0 : i32
    %c0_i32_1 = arith.constant 0 : i32
    %c0_i32_2 = arith.constant 0 : i32
    return %c0_i32, %arg1, %c0_i32_0, %c0_i32_1 : i32, i32, i32, i32
  }
  func.func @transform_1(%arg0: i32, %arg1: i32) -> (i32, i32, i32) {
    %c0_i32 = arith.constant 0 : i32
    %c0_i32_0 = arith.constant 0 : i32
    %c0_i32_1 = arith.constant 0 : i32
    return %c0_i32, %arg0, %c0_i32_0 : i32, i32, i32
  }
  func.func @transform_2(%arg0: i32, %arg1: i32) -> (i32, i32, i32, i32) {
    %c0_i32 = arith.constant 0 : i32
    %c0_i32_0 = arith.constant 0 : i32
    %c0_i32_1 = arith.constant 0 : i32
    return %c0_i32, %arg1, %arg0, %c0_i32_0 : i32, i32, i32, i32
  }
}

</mosaic_0001>

<bundles_post_ra>
// kernel: tpu_custom_call.1
= control target key start
LH: loop header
LB: loop body
LE: loop exit
PB: predicated region body
PF: predicated region fallthrough
CT: control target
= control target key end

     0   :  { %7 = vsyncpa [#allocation3], 0  ;;  %s239_s0 = inlined_call_operand.hbm [shape: f32[3,8,1,128], index: 0, kind: input, shape index: {}]   ;;  %s240_s1 = inlined_call_operand.vmem [shape: f32[3,1,128], index: 1, kind: input, shape index: {}]   ;;  %s241_s2 = inlined_call_operand.hbm [shape: f32[3,8,1,128], index: 2, kind: output, shape index: {}]  }
   0x1   :  { %8 = vsyncpa [#allocation4], 0  ;;  %s178_s9 = smov [#allocation2]   ;;  %s130_s13 = scalar_lea.hbm %s239_s0, 384 }
   0x2   :  { %s14_s10 = sshll.u32 %s178_s9, 4  ;;  %p131_p0 = scmp.ne.s32.totalorder %s239_s0, %s130_s13  ;;  %s15_s10 = int_to_ptr.vmem [resolvable:$true] %s14_s10 }
   0x3   :  { %p134_p1 = scmp.lt.u32.totalorder %s130_s13, %s239_s0 }
   0x5   :  { %p136_p2 = pnand %p134_p1, %p131_p0 }
   0x7   :  { %139 = shalt.err (!%p136_p2)
}
   0x8   :  { %s140_s18 = scalar_lea.vmem %s15_s10, 384  ;;  %p145_p4 = scmp.lt.s32.totalorder %s15_s10, %s15_s10 }
   0x9   :  { %p141_p3 = scmp.ne.s32.totalorder %s15_s10, %s140_s18  ;;  %p146_p5 = scmp.lt.s32.totalorder %s140_s18, %s140_s18 }
   0xb   :  { %p147_p6 = por %p146_p5, %p145_p4 }
   0xd   :  { %p148_p7 = pnand %p147_p6, %p141_p3 }
   0xf   :  { %151 = shalt.err (!%p148_p7)
}
  0x10   :  { %s179_s19 = smov 16   ;;  %s180_s20 = smov 1  }
  0x11   :  { %20 = dma.hbm_to_vmem [thread:$0]  %s239_s0, 384, %s15_s10, [#allocation3], %s179_s19, %s179_s19, %s180_s20  }
  0x12   :  { %174 = dma.done.wait [#allocation3], 384  }
  0x13   :  { %175 = vsyncadd [#allocation3], 4294966912  ;;  %s181_s23 = smov [#allocation5]   ;;  %v26_v0 = vld [vmem:[#allocation2] sm:$0x1] }
  0x14   :  { %s212_s24 = sshll.u32 %s181_s23, 4  ;;  %v34_v1 = vld [vmem:[%s240_s1] sm:$0x1]  ;;  %v27_v2 = vld [vmem:[#allocation2 + $0x1] sm:$0x1]  ;;  %s113_s24 = int_to_ptr.vmem [resolvable:$true] %s212_s24 }
  0x15   :  { %v35_v3 = vadd.f32 %v34_v1, %v26_v0  ;;  %v36_v4 = vadd.f32 %v34_v1, %v27_v2  ;;  %v28_v5 = vld [vmem:[#allocation2 + $0x2] sm:$0x1]  ;;  %v29_v6 = vld [vmem:[#allocation2 + $0x3] sm:$0x1]  ;;  %v30_v7 = vld [vmem:[#allocation2 + $0x4] sm:$0x1]  ;;  %p157_p9 = scmp.lt.s32.totalorder %s113_s24, %s113_s24 }
  0x16   :  { %v37_v8 = vadd.f32 %v34_v1, %v28_v5  ;;  %v38_v9 = vadd.f32 %v34_v1, %v29_v6  ;;  %v39_v10 = vadd.f32 %v34_v1, %v30_v7  ;;  %v31_v11 = vld [vmem:[#allocation2 + $0x5] sm:$0x1]  ;;  %v32_v12 = vld [vmem:[#allocation2 + $0x6] sm:$0x1]  ;;  %v33_v13 = vld [vmem:[#allocation2 + $0x7] sm:$0x1] }
  0x17   :  { %43 = vst [vmem:[#allocation5] sm:$0x1] %v35_v3  ;;  %44 = vst [vmem:[#allocation5 + $0x1] sm:$0x1] %v36_v4  ;;  %v40_v14 = vadd.f32 %v34_v1, %v31_v11  ;;  %v41_v15 = vadd.f32 %v34_v1, %v32_v12  ;;  %v42_v16 = vadd.f32 %v34_v1, %v33_v13  ;;  %v52_v17 = vld [vmem:[#allocation2 + $0x8] sm:$0x1] }
  0x18   :  { %v124_v18 = vld [vmem:[%s240_s1 + $0x1] sm:$0x1]  ;;  %v53_v19 = vld [vmem:[#allocation2 + $0x9] sm:$0x1]  ;;  %45 = vst [vmem:[#allocation5 + $0x2] sm:$0x1] %v37_v8 }
  0x19   :  { %46 = vst [vmem:[#allocation5 + $0x3] sm:$0x1] %v38_v9  ;;  %47 = vst [vmem:[#allocation5 + $0x4] sm:$0x1] %v39_v10  ;;  %v62_v20 = vadd.f32 %v124_v18, %v52_v17  ;;  %v63_v21 = vadd.f32 %v124_v18, %v53_v19  ;;  %v54_v22 = vld [vmem:[#allocation2 + $0xa] sm:$0x1] }
  0x1a   :  { %v55_v23 = vld [vmem:[#allocation2 + $0xb] sm:$0x1]  ;;  %v56_v24 = vld [vmem:[#allocation2 + $0xc] sm:$0x1]  ;;  %48 = vst [vmem:[#allocation5 + $0x5] sm:$0x1] %v40_v14  ;;  %v64_v25 = vadd.f32 %v124_v18, %v54_v22 }
  0x1b   :  { %49 = vst [vmem:[#allocation5 + $0x6] sm:$0x1] %v41_v15  ;;  %50 = vst [vmem:[#allocation5 + $0x7] sm:$0x1] %v42_v16  ;;  %v65_v26 = vadd.f32 %v124_v18, %v55_v23  ;;  %v66_v27 = vadd.f32 %v124_v18, %v56_v24  ;;  %v57_v28 = vld [vmem:[#allocation2 + $0xd] sm:$0x1] }
  0x1c   :  { %v58_v29 = vld [vmem:[#allocation2 + $0xe] sm:$0x1]  ;;  %v59_v30 = vld [vmem:[#allocation2 + $0xf] sm:$0x1]  ;;  %71 = vst [vmem:[#allocation5 + $0x8] sm:$0x1] %v62_v20  ;;  %v67_v31 = vadd.f32 %v124_v18, %v57_v28 }
  0x1d   :  { %72 = vst [vmem:[#allocation5 + $0x9] sm:$0x1] %v63_v21  ;;  %v68_v32 = vadd.f32 %v124_v18, %v58_v29  ;;  %v69_v33 = vadd.f32 %v124_v18, %v59_v30  ;;  %v80_v34 = vld [vmem:[#allocation2 + $0x10] sm:$0x1]  ;;  %v125_v35 = vld [vmem:[%s240_s1 + $0x2] sm:$0x1] }
  0x1e   :  { %v81_v36 = vld [vmem:[#allocation2 + $0x11] sm:$0x1]  ;;  %73 = vst [vmem:[#allocation5 + $0xa] sm:$0x1] %v64_v25  ;;  %74 = vst [vmem:[#allocation5 + $0xb] sm:$0x1] %v65_v26  ;;  %v90_v37 = vadd.f32 %v125_v35, %v80_v34 }
  0x1f   :  { %75 = vst [vmem:[#allocation5 + $0xc] sm:$0x1] %v66_v27  ;;  %v91_v38 = vadd.f32 %v125_v35, %v81_v36  ;;  %v82_v39 = vld [vmem:[#allocation2 + $0x12] sm:$0x1]  ;;  %v83_v40 = vld [vmem:[#allocation2 + $0x13] sm:$0x1] }
  0x20   :  { %v84_v41 = vld [vmem:[#allocation2 + $0x14] sm:$0x1]  ;;  %76 = vst [vmem:[#allocation5 + $0xd] sm:$0x1] %v67_v31  ;;  %77 = vst [vmem:[#allocation5 + $0xe] sm:$0x1] %v68_v32  ;;  %v92_v42 = vadd.f32 %v125_v35, %v82_v39  ;;  %v93_v43 = vadd.f32 %v125_v35, %v83_v40 }
  0x21   :  { %78 = vst [vmem:[#allocation5 + $0xf] sm:$0x1] %v69_v33  ;;  %v94_v44 = vadd.f32 %v125_v35, %v84_v41  ;;  %v85_v45 = vld [vmem:[#allocation2 + $0x15] sm:$0x1]  ;;  %v86_v46 = vld [vmem:[#allocation2 + $0x16] sm:$0x1] }
  0x22   :  { %v87_v47 = vld [vmem:[#allocation2 + $0x17] sm:$0x1]  ;;  %99 = vst [vmem:[#allocation5 + $0x10] sm:$0x1] %v90_v37  ;;  %100 = vst [vmem:[#allocation5 + $0x11] sm:$0x1] %v91_v38  ;;  %v95_v48 = vadd.f32 %v125_v35, %v85_v45  ;;  %v96_v49 = vadd.f32 %v125_v35, %v86_v46 }
  0x23   :  { %v97_v50 = vadd.f32 %v125_v35, %v87_v47  ;;  %101 = vst [vmem:[#allocation5 + $0x12] sm:$0x1] %v92_v42  ;;  %102 = vst [vmem:[#allocation5 + $0x13] sm:$0x1] %v93_v43  ;;  %s152_s1 = scalar_lea.vmem %s113_s24, 384 }
  0x24   :  { %103 = vst [vmem:[#allocation5 + $0x14] sm:$0x1] %v94_v44  ;;  %104 = vst [vmem:[#allocation5 + $0x15] sm:$0x1] %v95_v48  ;;  %p153_p8 = scmp.ne.s32.totalorder %s113_s24, %s152_s1  ;;  %p158_p10 = scmp.lt.s32.totalorder %s152_s1, %s152_s1 }
  0x25   :  { %105 = vst [vmem:[#allocation5 + $0x16] sm:$0x1] %v96_v49  ;;  %106 = vst [vmem:[#allocation5 + $0x17] sm:$0x1] %v97_v50 }
  0x26   :  { %p159_p11 = por %p158_p10, %p157_p9 }
  0x28   :  { %p160_p12 = pnand %p159_p11, %p153_p8 }
  0x2a   :  { %163 = shalt.err (!%p160_p12)
}
  0x2b   :  { %s164_s4 = scalar_lea.hbm %s241_s2, 384 }
  0x2c   :  { %p165_p13 = scmp.ne.s32.totalorder %s241_s2, %s164_s4  ;;  %p168_p0 = scmp.lt.u32.totalorder %s164_s4, %s241_s2 }
  0x2e   :  { %p170_p1 = pnand %p168_p0, %p165_p13 }
  0x30   :  { %173 = shalt.err (!%p170_p1)
}
  0x31   :  { %118 = dma.vmem_to_hbm [thread:$0]  %s113_s24, 384, %s241_s2, [#allocation4], %s179_s19, %s179_s19, %s180_s20  }
  0x32   :  { %176 = dma.done.wait [#allocation4], 384  }
  0x33   :  { %177 = vsyncadd [#allocation4], 4294966912 }
  0x34   :  { %122 = vsyncpa [#allocation3], 1 }
  0x35   :  { %123 = vsyncpa [#allocation4], 1 }

</bundles_post_ra>
